<compile_context>
chip_gen: v7x
topology: tpu7x:2x2x1
jax: 0.10.0
libtpu: 0.0.40
codegen_flags: <defaults>
</compile_context>

<pallas_src>
import functools

import jax
import jax.numpy as jnp
from jax.experimental import pallas as pl
from jax.experimental.pallas import tpu as pltpu


def _mlp_fused_kernel(x_ref, *refs, apply_acts):
    """Fused multi-layer MLP: refs = (w0, b0, w1, b1, ..., o_ref).

    The layer loop is a static Python loop (unrolled at trace time); all
    intermediates live in VMEM/vregs, never touching HBM.
    """
    o_ref = refs[-1]
    param_refs = refs[:-1]
    y = x_ref[...]
    for i, act in enumerate(apply_acts):
        w = param_refs[2 * i][...]
        b = param_refs[2 * i + 1][...]
        # MXU matmul with f32 accumulation + bias (BN already folded into w/b).
        y = jnp.dot(y, w, preferred_element_type=jnp.float32) + b
        if act:
            y = jnp.maximum(y, 0.0)  # ReLU; Dropout(p=0.3) is identity in eval.
    o_ref[...] = y.astype(o_ref.dtype)


def fold_bn_into_linear(params, last_activation=True, eps=1e-5):
    """One-time transform: fold eval-mode BatchNorm1d into each Linear.

    Returns (flat_params, apply_acts) where flat_params = [w0, b0, w1, b1, ...]
    with w' = w * gamma/sqrt(var+eps) and b' = b * scale + (beta - mean*scale).
    """
    n_layers = len(params)
    apply_acts = tuple(
        (i < n_layers - 1) or last_activation for i in range(n_layers))
    flat = []
    for i, p in enumerate(params):
        if apply_acts[i]:
            scale = p["gamma"] / jnp.sqrt(p["running_var"] + eps)   # (1, D_out)
            shift = p["beta"] - p["running_mean"] * scale           # (1, D_out)
            w = p["w"] * scale          # per-output-column scaling
            b = p["b"] * scale + shift
        else:
            w, b = p["w"], p["b"]
        flat += [w, b]
    return flat, apply_acts


def mlp_forward_fused(x, flat_params, apply_acts, *, tile_m=256):
    """Single pallas_call for the whole MLP, tiled only over the batch dim."""
    n, d_in = x.shape
    d_out = flat_params[-2].shape[1]

    # Largest batch tile that fits comfortably; collapses to one grid step for
    # small N.  256 is a multiple of 8 (sublane constraint); when tile_m == n
    # the block equals the full array dim, which is also legal.
    tile_m = min(tile_m, n)
    grid = (pl.cdiv(n, tile_m),)

    in_specs = [pl.BlockSpec((tile_m, d_in), lambda i: (i, 0))]
    for w, b in zip(flat_params[0::2], flat_params[1::2]):
        # Weights/biases are tiny and constant across the grid: full-array
        # blocks, resident in VMEM for the whole kernel.
        in_specs.append(pl.BlockSpec(w.shape, lambda i: (0, 0)))
        in_specs.append(pl.BlockSpec(b.shape, lambda i: (0, 0)))

    # NOTE: D_out < 128 here means masked (lane-sparse) output stores; that is
    # dictated by the model's hidden sizes, not the kernel.
    out_specs = pl.BlockSpec((tile_m, d_out), lambda i: (i, 0))

    kernel = functools.partial(_mlp_fused_kernel, apply_acts=apply_acts)
    return pl.pallas_call(
        kernel,
        out_shape=jax.ShapeDtypeStruct((n, d_out), x.dtype),
        grid=grid,
        in_specs=in_specs,
        out_specs=out_specs,
        compiler_params=pltpu.CompilerParams(
            dimension_semantics=("parallel",)),
    )(x, *flat_params)


def init_mlp_params(key, hidden_size):
    """Deterministic parameter init (shapes match nn.Linear / nn.BatchNorm1d)."""
    params = []
    for i in range(len(hidden_size) - 1):
        key, kw, kb = jax.random.split(key, 3)
        d_in, d_out = hidden_size[i], hidden_size[i + 1]
        bound = 1.0 / (d_in ** 0.5)
        w = jax.random.uniform(kw, (d_in, d_out), jnp.float32, -bound, bound)
        b = jax.random.uniform(kb, (1, d_out), jnp.float32, -bound, bound)
        params.append(dict(
            w=w, b=b,
            gamma=jnp.ones((1, d_out), jnp.float32),
            beta=jnp.zeros((1, d_out), jnp.float32),
            running_mean=jnp.zeros((1, d_out), jnp.float32),
            running_var=jnp.ones((1, d_out), jnp.float32),
        ))
    return params


def mlp_forward_ref(x, params, last_activation=True, eps=1e-5):
    """Pure-JAX reference of the same (inference-mode) semantics."""
    n_layers = len(params)
    for i, p in enumerate(params):
        apply_act = (i < n_layers - 1) or last_activation
        y = x @ p["w"] + p["b"]
        if apply_act:
            scale = p["gamma"] / jnp.sqrt(p["running_var"] + eps)
            shift = p["beta"] - p["running_mean"] * scale
            y = jnp.maximum(y * scale + shift, 0.0)
        x = y
    return x


if __name__ == "__main__":
    hidden_size = (32, 64, 16)   # MLP(hidden_size=[32, 64, 16], last_activation=True)
    batch = 16

    key = jax.random.PRNGKey(0)
    key, kx = jax.random.split(key)
    x = jax.random.normal(kx, (batch, hidden_size[0]), jnp.float32)

    params = init_mlp_params(key, hidden_size)

    # One-time BN fold, then a single fused Pallas kernel for the whole MLP.
    flat_params, apply_acts = fold_bn_into_linear(params, last_activation=True)
    out = mlp_forward_fused(x, flat_params, apply_acts)
    out = jax.block_until_ready(out)

    ref = mlp_forward_ref(x, params, last_activation=True)
    assert out.shape == (batch, hidden_size[-1])
    assert jnp.allclose(out, ref, atol=1e-5, rtol=1e-5), "mismatch vs reference"

    print("KERNEL_OK")
</pallas_src>

<mosaic_0001>
module attributes {stable_mosaic.version = 11 : i64} {
  func.func @_mlp_fused_kernel(%arg0: i32, %arg1: memref<16x32xf32, #tpu.memory_space<vmem>>, %arg2: memref<32x64xf32, #tpu.memory_space<vmem>>, %arg3: memref<1x64xf32, #tpu.memory_space<vmem>>, %arg4: memref<64x16xf32, #tpu.memory_space<vmem>>, %arg5: memref<1x16xf32, #tpu.memory_space<vmem>>, %arg6: memref<16x16xf32, #tpu.memory_space<vmem>>) attributes {dimension_semantics = [#tpu.dimension_semantics<parallel>], iteration_bounds = array<i64: 1>, scalar_prefetch = 0 : i64, scratch_operands = 0 : i64, tpu.core_type = #tpu.core_type<tc>, window_params = [{transform_indices = @transform_0, window_bounds = array<i64: 16, 32>}, {pipeline_mode = #tpu.pipeline_mode<synchronous>, transform_indices = @transform_1, window_bounds = array<i64: 32, 64>}, {pipeline_mode = #tpu.pipeline_mode<synchronous>, transform_indices = @transform_2, window_bounds = array<i64: 1, 64>}, {pipeline_mode = #tpu.pipeline_mode<synchronous>, transform_indices = @transform_3, window_bounds = array<i64: 64, 16>}, {pipeline_mode = #tpu.pipeline_mode<synchronous>, transform_indices = @transform_4, window_bounds = array<i64: 1, 16>}, {transform_indices = @transform_5, window_bounds = array<i64: 16, 16>}]} {
    %c0 = arith.constant 0 : index
    %c0_0 = arith.constant 0 : index
    %0 = vector.load %arg1[%c0, %c0_0] : memref<16x32xf32, #tpu.memory_space<vmem>>, vector<16x32xf32>
    %c0_1 = arith.constant 0 : index
    %c0_2 = arith.constant 0 : index
    %1 = vector.load %arg2[%c0_1, %c0_2] : memref<32x64xf32, #tpu.memory_space<vmem>>, vector<32x64xf32>
    %c0_3 = arith.constant 0 : index
    %c0_4 = arith.constant 0 : index
    %2 = vector.load %arg3[%c0_3, %c0_4] : memref<1x64xf32, #tpu.memory_space<vmem>>, vector<1x64xf32>
    %cst = arith.constant dense<0.000000e+00> : vector<16x64xf32>
    %3 = tpu.matmul %0, %1, %cst {dimension_numbers = #tpu.dot_dimension_numbers<[1], [0], [0], [1], [0, 0, 1, 1], [], []>} : vector<16x32xf32>, vector<32x64xf32>, vector<16x64xf32> -> vector<16x64xf32>
    %4 = vector.broadcast %2 : vector<1x64xf32> to vector<16x64xf32>
    %5 = arith.addf %3, %4 : vector<16x64xf32>
    %cst_5 = arith.constant 0.000000e+00 : f32
    %6 = vector.broadcast %cst_5 : f32 to vector<16x64xf32>
    %7 = arith.maximumf %5, %6 : vector<16x64xf32>
    %c0_6 = arith.constant 0 : index
    %c0_7 = arith.constant 0 : index
    %8 = vector.load %arg4[%c0_6, %c0_7] : memref<64x16xf32, #tpu.memory_space<vmem>>, vector<64x16xf32>
    %c0_8 = arith.constant 0 : index
    %c0_9 = arith.constant 0 : index
    %9 = vector.load %arg5[%c0_8, %c0_9] : memref<1x16xf32, #tpu.memory_space<vmem>>, vector<1x16xf32>
    %cst_10 = arith.constant dense<0.000000e+00> : vector<16x16xf32>
    %10 = tpu.matmul %7, %8, %cst_10 {dimension_numbers = #tpu.dot_dimension_numbers<[1], [0], [0], [1], [0, 0, 1, 1], [], []>} : vector<16x64xf32>, vector<64x16xf32>, vector<16x16xf32> -> vector<16x16xf32>
    %11 = vector.broadcast %9 : vector<1x16xf32> to vector<16x16xf32>
    %12 = arith.addf %10, %11 : vector<16x16xf32>
    %cst_11 = arith.constant 0.000000e+00 : f32
    %13 = vector.broadcast %cst_11 : f32 to vector<16x16xf32>
    %14 = arith.maximumf %12, %13 : vector<16x16xf32>
    %c0_12 = arith.constant 0 : index
    %c0_13 = arith.constant 0 : index
    %15 = vector.load %arg6[%c0_12, %c0_13] : memref<16x16xf32, #tpu.memory_space<vmem>>, vector<16x16xf32>
    tpu.vector_store %arg6[%c0_12, %c0_13], %14 {strides = array<i32>} : memref<16x16xf32, #tpu.memory_space<vmem>>, vector<16x16xf32>,
    return
  }
  func.func @transform_0(%arg0: i32) -> (i32, i32) {
    %c0_i32 = arith.constant 0 : i32
    %c0_i32_0 = arith.constant 0 : i32
    return %arg0, %c0_i32 : i32, i32
  }
  func.func @transform_1(%arg0: i32) -> (i32, i32) {
    %c0_i32 = arith.constant 0 : i32
    %c0_i32_0 = arith.constant 0 : i32
    %c0_i32_1 = arith.constant 0 : i32
    return %c0_i32, %c0_i32_0 : i32, i32
  }
  func.func @transform_2(%arg0: i32) -> (i32, i32) {
    %c0_i32 = arith.constant 0 : i32
    %c0_i32_0 = arith.constant 0 : i32
    %c0_i32_1 = arith.constant 0 : i32
    return %c0_i32, %c0_i32_0 : i32, i32
  }
  func.func @transform_3(%arg0: i32) -> (i32, i32) {
    %c0_i32 = arith.constant 0 : i32
    %c0_i32_0 = arith.constant 0 : i32
    %c0_i32_1 = arith.constant 0 : i32
    return %c0_i32, %c0_i32_0 : i32, i32
  }
  func.func @transform_4(%arg0: i32) -> (i32, i32) {
    %c0_i32 = arith.constant 0 : i32
    %c0_i32_0 = arith.constant 0 : i32
    %c0_i32_1 = arith.constant 0 : i32
    return %c0_i32, %c0_i32_0 : i32, i32
  }
  func.func @transform_5(%arg0: i32) -> (i32, i32) {
    %c0_i32 = arith.constant 0 : i32
    %c0_i32_0 = arith.constant 0 : i32
    return %arg0, %c0_i32 : i32, i32
  }
}

</mosaic_0001>

<bundles_post_ra>
// kernel: tpu_custom_call.1
= control target key start
LH: loop header
LB: loop body
LE: loop exit
PB: predicated region body
PF: predicated region fallthrough
CT: control target
= control target key end

     0   :  { %vm34_vm0 = vcmask 261120   ;;  %s434_s0 = inlined_call_operand.vmem [shape: f32[16,32], index: 0, kind: input, shape index: {}]   ;;  %s435_s1 = inlined_call_operand.vmem [shape: f32[32,64], index: 1, kind: input, shape index: {}]   ;;  %s436_s2 = inlined_call_operand.vmem [shape: f32[1,64], index: 2, kind: input, shape index: {}]   ;;  %s437_s3 = inlined_call_operand.vmem [shape: f32[64,16], index: 3, kind: input, shape index: {}]   ;;  %s438_s4 = inlined_call_operand.vmem [shape: f32[1,16], index: 4, kind: input, shape index: {}]   ;;  %s439_s5 = inlined_call_operand.hbm [shape: f32[16,16], index: 5, kind: output, shape index: {}]  }
   0x1   :  { %v23_v0 = vld [vmem:[%s435_s1] sm:$0xff]  ;;  %v24_v1 = vld [vmem:[%s435_s1 + $0x8] sm:$0xff]  ;;  %v25_v2 = vld [vmem:[%s435_s1 + $0x10] sm:$0xff] }
   0x2   :  { %v288_v3 = vpack.c.bf16 %v24_v1, %v23_v0  ;;  %v26_v4 = vld [vmem:[%s435_s1 + $0x18] sm:$0xff]  ;;  %v21_v5 = vld [vmem:[%s434_s0] sm:$0xff]  ;;  %v119_v8 = vld [vmem:[%s437_s3 + $0x8] sm:$0xff] }
   0x3   :  { %v292_v6 = vpack.c.bf16 %v26_v4, %v25_v2  ;;  %266 = vmatprep.mubr.msk.f32.mxu0 %vm34_vm0, %v21_v5  ;;  %v118_v7 = vld [vmem:[%s437_s3] sm:$0xff]  ;;  %v120_v9 = vld [vmem:[%s437_s3 + $0x10] sm:$0xff]  ;;  %v121_v11 = vld [vmem:[%s437_s3 + $0x18] sm:$0xff] }
   0x4   :  { %289 = vmatprep.subr.bf16.mxu0 %v288_v3  ;;  %v296_v10 = vpack.c.bf16 %v119_v8, %v118_v7  ;;  %v300_v12 = vpack.c.bf16 %v121_v11, %v120_v9  ;;  %v122_v13 = vld [vmem:[%s437_s3 + $0x20] sm:$0xff]  ;;  %v123_v14 = vld [vmem:[%s437_s3 + $0x28] sm:$0xff] }
   0x5   :  { %291 = vmatpush3.bf16.msra.mxu0 %v288_v3 }
   0x6   :  { %10 = vsyncpa [#allocation3], 0  ;;  %293 = vmatprep.subr.bf16.mxu0 %v292_v6  ;;  %297 = vmatprep.subr.bf16.mxu1 %v296_v10  ;;  %v304_v15 = vpack.c.bf16 %v123_v14, %v122_v13  ;;  %v22_v16 = vld [vmem:[%s434_s0 + $0x8] sm:$0xff]  ;;  %v124_v17 = vld [vmem:[%s437_s3 + $0x30] sm:$0xff]  ;;  %vm133_vm1 = vcmask 523264   ;;  %vm217_vm2 = vcmask 130048  }
   0x7   :  { %299 = vmatpush3.bf16.msra.mxu1 %v296_v10  ;;  %v125_v18 = vld [vmem:[%s437_s3 + $0x38] sm:$0xff]  ;;  %v236_v20 = vld [vmem:[%s436_s2] ss:$0 sm:$0xff]  ;;  %s339_s3 = smov [#allocation2]  }
   0x8   :  { %301 = vmatprep.subr.bf16.mxu1 %v300_v12  ;;  %v308_v19 = vpack.c.bf16 %v125_v18, %v124_v17  ;;  %v239_v27 = vld [vmem:[%s438_s4] ss:$0 sm:$0xff]  ;;  %s225_s23 = sshll.u32 %s339_s3, 4  ;;  %s226_s23 = int_to_ptr.vmem [resolvable:$true] %s225_s23 }
   0x9   :  { %295 = vmatpush3.bf16.msra.mxu0 %v292_v6  ;;  %s315_s2 = scalar_lea.vmem %s226_s23, 256  ;;  %p320_p1 = scmp.lt.s32.totalorder %s226_s23, %s226_s23 }
   0xa   :  { %p316_p0 = scmp.ne.s32.totalorder %s226_s23, %s315_s2  ;;  %p321_p2 = scmp.lt.s32.totalorder %s315_s2, %s315_s2 }
   0xb   :  { %303 = vmatpush3.bf16.msra.mxu1 %v300_v12 }
   0xc   :  { %267 = vmatmul.mubr.msk.f32.vlgmr.msra.gmra.mrb[0].mxu0 %vm34_vm0, %v22_v16  ;;  %305 = vmatprep.subr.bf16.mxu1 %v304_v15  ;;  %p322_p3 = por %p321_p2, %p320_p1 }
   0xe   :  { %p323_p4 = pnand %p322_p3, %p316_p0 }
   0xf   :  { %307 = vmatpush3.bf16.msra.mxu1 %v304_v15 }
  0x10   :  { %309 = vmatprep.subr.bf16.mxu1 %v308_v19 }
  0x13   :  { %311 = vmatpush3.bf16.msra.mxu1 %v308_v19 }
  0xdf   :  { %v268_v21 = vpop.f32.mrb[0].mxu0 }
  0xe0   :  { %v113_v22 = vadd.f32 %v268_v21, %v236_v20  ;;  %v107_v23 = vpop.f32.mrb[1].mxu0 }
  0xe1   :  { %v108_v24 = vadd.f32 %v236_v20, %v107_v23 }
  0xe2   :  { %v117_v26 = vmax.f32 %v113_v22, 0.0 }
  0xe3   :  { %v116_v25 = vmax.f32 %v108_v24, 0.0 }
  0xe5   :  { %285 = vmatprep.mubr.msk.f32.mxu1 %vm133_vm1, %v116_v25 }
  0xe6   :  { %286 = vmatmul.mubr.msk.f32.vlgmr.msra.gmra.mrb[0].mxu1 %vm133_vm1, %v117_v26 }
 0x1b9   :  { %v287_v28 = vpop.f32.mrb[0].mxu1 }
 0x1ba   :  { %v212_v29 = vadd.f32 %v287_v28, %v239_v27  ;;  %v206_v30 = vpop.f32.mrb[1].mxu1 }
 0x1bb   :  { %v207_v31 = vadd.f32 %v239_v27, %v206_v30 }
 0x1bc   :  { %v216_v32 = vmax.f32 %v212_v29, 0.0 }
 0x1bd   :  { %v215_v33 = vmax.f32 %v207_v31, 0.0 }
 0x1be   :  { %219 = vst.msk [vmem:[#allocation2 + $0x8] sm:$0xff] %vm217_vm2, %v216_v32 }
 0x1bf   :  { %218 = vst.msk [vmem:[#allocation2] sm:$0xff] %vm217_vm2, %v215_v33 }
 0x1c0   :  { %326 = shalt.err (!%p323_p4)
}
 0x1c1   :  { %s327_s25 = scalar_lea.hbm %s439_s5, 256 }
 0x1c2   :  { %p328_p5 = scmp.ne.s32.totalorder %s439_s5, %s327_s25  ;;  %p331_p6 = scmp.lt.u32.totalorder %s327_s25, %s439_s5 }
 0x1c4   :  { %p333_p7 = pnand %p331_p6, %p328_p5 }
 0x1c6   :  { %336 = shalt.err (!%p333_p7)
}
 0x1c7   :  { %s340_s30 = smov 128   ;;  %s341_s6 = smov 8  }
 0x1c8   :  { %231 = dma.vmem_to_hbm [thread:$0]  %s226_s23, 256, %s439_s5, [#allocation3], %s340_s30, %s340_s30, %s341_s6  }
 0x1c9   :  { %337 = dma.done.wait [#allocation3], 256  }
 0x1ca   :  { %338 = vsyncadd [#allocation3], 4294967040 }
 0x1cb   :  { %235 = vsyncpa [#allocation3], 1 }

</bundles_post_ra>
